<compile_context>
chip_gen: v7x
topology: tpu7x:2x2x1
jax: 0.10.0
libtpu: 0.0.40
codegen_flags: <defaults>
</compile_context>

<pallas_src>
import functools

import jax
import jax.numpy as jnp
from jax.experimental import pallas as pl
from jax.experimental.pallas import tpu as pltpu


def _round_up(v, m):
    return (v + m - 1) // m * m


def _choose_kernel(x_ref, wt_ref, y_ref, out_ref, loss_ref, acc_ref,
                   *, b_actual, b_padded, h_actual, tb):
    """One (batch-tile, k-tile) step of relu(x @ W.T) + per-row cross-entropy."""
    k = pl.program_id(1)
    nk = pl.num_programs(1)

    @pl.when(k == 0)
    def _():
        acc_ref[...] = jnp.zeros_like(acc_ref)

    # MXU matmul: bf16 operands, f32 accumulation.
    acc_ref[...] += jnp.dot(x_ref[...], wt_ref[...],
                            preferred_element_type=jnp.float32)

    @pl.when(k == nk - 1)
    def _():
        logits = jnp.maximum(acc_ref[...], 0.0)                     # ReLU (f32)
        out_ref[...] = logits.astype(out_ref.dtype)

        tb_, hp = logits.shape
        cols = jax.lax.broadcasted_iota(jnp.int32, (tb_, hp), 1)

        # Exclude zero-padded hidden columns from the log-sum-exp.
        if h_actual == hp:
            masked = logits
        else:
            masked = jnp.where(cols < h_actual, logits, jnp.float32(-1e30))

        m = jnp.max(masked, axis=-1, keepdims=True)
        lse = m + jnp.log(jnp.sum(jnp.exp(masked - m), axis=-1, keepdims=True))

        onehot = (cols == y_ref[...]).astype(jnp.float32)           # y: (TB, 1)
        picked = jnp.sum(onehot * logits, axis=-1, keepdims=True)

        per_row = lse - picked                                      # (TB, 1)
        if b_actual != b_padded:
            rows = (jax.lax.broadcasted_iota(jnp.int32, (tb_, 1), 0)
                    + pl.program_id(0) * tb)
            per_row = jnp.where(rows < b_actual, per_row, 0.0)
        loss_ref[...] = per_row


def _forward_pallas(x, wt_padded, y, *, hidden_dim):
    """x: (B, H) f32, wt_padded: (Hp, Hp) bf16 (pre-transposed W), y: (B,) int."""
    B, H = x.shape
    assert H == hidden_dim
    Hp = wt_padded.shape[0]

    TB = min(128, _round_up(B, 8))
    Bp = _round_up(B, TB)
    if Hp <= 512:
        TK = Hp
    else:
        TK = 512 if Hp % 512 == 0 else (256 if Hp % 256 == 0 else 128)
    nb, nk = Bp // TB, Hp // TK

    xp = jnp.pad(x.astype(jnp.bfloat16), ((0, Bp - B), (0, Hp - H)))
    yp = jnp.pad(y.astype(jnp.int32).reshape(B, 1), ((0, Bp - B), (0, 0)))

    kernel = functools.partial(_choose_kernel, b_actual=B, b_padded=Bp,
                               h_actual=H, tb=TB)

    cost = pl.CostEstimate(
        flops=2 * Bp * Hp * Hp,
        transcendentals=Bp * Hp,
        bytes_accessed=Bp * Hp * 2 + Hp * Hp * 2 + Bp * Hp * 4 + Bp * 8,
    )

    # VMEM budget: double-buffered wt/x/out blocks + f32 accumulator (+ headroom).
    vmem_bytes = (2 * TK * Hp * 2 + 2 * TB * TK * 2 + 2 * TB * Hp * 4
                  + TB * Hp * 4 + 4 * TB * 8)
    vmem_limit = min(max(vmem_bytes + (8 << 20), 32 << 20), 64 << 20)

    out_p, loss_rows = pl.pallas_call(
        kernel,
        out_shape=(
            jax.ShapeDtypeStruct((Bp, Hp), jnp.float32),
            jax.ShapeDtypeStruct((Bp, 1), jnp.float32),
        ),
        grid_spec=pltpu.PrefetchScalarGridSpec(
            num_scalar_prefetch=0,
            grid=(nb, nk),
            in_specs=[
                pl.BlockSpec((TB, TK), lambda b, k: (b, k)),   # x tile
                pl.BlockSpec((TK, Hp), lambda b, k: (k, 0)),   # W.T k-slab
                pl.BlockSpec((TB, 1), lambda b, k: (b, 0)),    # labels
            ],
            out_specs=[
                pl.BlockSpec((TB, Hp), lambda b, k: (b, 0)),   # relu(x @ W.T)
                pl.BlockSpec((TB, 1), lambda b, k: (b, 0)),    # per-row CE loss
            ],
            scratch_shapes=[pltpu.VMEM((TB, Hp), jnp.float32)],
        ),
        compiler_params=pltpu.CompilerParams(
            dimension_semantics=("parallel", "arbitrary"),
            vmem_limit_bytes=vmem_limit,
        ),
        cost_estimate=cost,
    )(xp, wt_padded, yp)

    out = out_p[:B, :H]
    loss = jnp.sum(loss_rows) / jnp.float32(B)
    return out, loss


class ChooseModuleByCounter:
    """JAX/Pallas port: two bias-free Linear(H, H); forward picks
    linears[counter % 2], applies ReLU, computes CrossEntropyLoss, bumps counter."""

    def __init__(self, hidden_dim, key):
        self.hidden_dim = hidden_dim
        k0, k1 = jax.random.split(key)
        bound = 1.0 / (hidden_dim ** 0.5)
        # PyTorch Linear weight shape: (out_features, in_features), bias=False.
        self.weights = [
            jax.random.uniform(k0, (hidden_dim, hidden_dim), jnp.float32, -bound, bound),
            jax.random.uniform(k1, (hidden_dim, hidden_dim), jnp.float32, -bound, bound),
        ]
        hp = _round_up(hidden_dim, 128)
        # Pre-transpose + zero-pad + bf16-cast once (no per-call w.T HBM copy).
        self.wt_kernel = [
            jnp.pad(w.T, ((0, hp - hidden_dim), (0, hp - hidden_dim))).astype(jnp.bfloat16)
            for w in self.weights
        ]
        self.counter = 0

    def __call__(self, x, y):
        wt = self.wt_kernel[self.counter % len(self.wt_kernel)]
        out, loss = _forward_pallas(x, wt, y, hidden_dim=self.hidden_dim)
        self.counter += 1
        return out, loss


def _reference(x, w, y):
    # Same precision path as the kernel: bf16 operands, f32 accumulation.
    xb = x.astype(jnp.bfloat16)
    wb = w.astype(jnp.bfloat16)
    logits = jnp.maximum(jnp.dot(xb, wb.T, preferred_element_type=jnp.float32), 0.0)
    lse = jax.scipy.special.logsumexp(logits, axis=-1)
    picked = jnp.take_along_axis(logits, y[:, None], axis=-1)[:, 0]
    return logits, jnp.mean(lse - picked)


if __name__ == "__main__":
    key = jax.random.PRNGKey(0)
    k_mod, k_x, k_y = jax.random.split(key, 3)

    batch, hidden = 8, 32
    x = jax.random.normal(k_x, (batch, hidden), dtype=jnp.float32)
    y = jax.random.randint(k_y, (batch,), 0, hidden, dtype=jnp.int32)

    module = ChooseModuleByCounter(hidden, k_mod)

    out, loss = module(x, y)                      # uses linears[0]
    out, loss = jax.block_until_ready((out, loss))

    ref_out, ref_loss = _reference(x, module.weights[0], y)
    assert jnp.allclose(out, ref_out, atol=1e-4, rtol=1e-4)
    assert jnp.allclose(loss, ref_loss, atol=1e-4, rtol=1e-4)

    out2, loss2 = module(x, y)                    # uses linears[1]
    jax.block_until_ready((out2, loss2))
    ref_out2, ref_loss2 = _reference(x, module.weights[1], y)
    assert jnp.allclose(out2, ref_out2, atol=1e-4, rtol=1e-4)
    assert jnp.allclose(loss2, ref_loss2, atol=1e-4, rtol=1e-4)

    print("KERNEL_OK")
</pallas_src>

<mosaic_0001>
module attributes {stable_mosaic.version = 11 : i64} {
  func.func @_choose_kernel(%arg0: i32, %arg1: i32, %arg2: memref<8x128xbf16, #tpu.memory_space<vmem>>, %arg3: memref<128x128xbf16, #tpu.memory_space<vmem>>, %arg4: memref<8x1xi32, #tpu.memory_space<vmem>>, %arg5: memref<8x128xf32, #tpu.memory_space<vmem>>, %arg6: memref<8x1xf32, #tpu.memory_space<vmem>>, %arg7: memref<8x128xf32, #tpu.memory_space<vmem>>) attributes {dimension_semantics = [#tpu.dimension_semantics<parallel>, #tpu.dimension_semantics<arbitrary>], iteration_bounds = array<i64: 1, 1>, scalar_prefetch = 0 : i64, scratch_operands = 1 : i64, tpu.core_type = #tpu.core_type<tc>, window_params = [{transform_indices = @transform_0, window_bounds = array<i64: 8, 128>}, {transform_indices = @transform_1, window_bounds = array<i64: 128, 128>}, {transform_indices = @transform_2, window_bounds = array<i64: 8, 1>}, {transform_indices = @transform_3, window_bounds = array<i64: 8, 128>}, {transform_indices = @transform_4, window_bounds = array<i64: 8, 1>}]} {
    %c0_i32 = arith.constant 0 : i32
    %0 = arith.cmpi eq, %arg1, %c0_i32 : i32
    %1 = arith.extui %0 : i1 to i32
    %c0_i32_0 = arith.constant 0 : i32
    %2 = arith.cmpi ne, %1, %c0_i32_0 : i32
    scf.if %2 {
      %cst_10 = arith.constant 0.000000e+00 : f32
      %12 = vector.broadcast %cst_10 : f32 to vector<8x128xf32>
      %c0_11 = arith.constant 0 : index
      %c0_12 = arith.constant 0 : index
      %13 = vector.load %arg7[%c0_11, %c0_12] : memref<8x128xf32, #tpu.memory_space<vmem>>, vector<8x128xf32>
      tpu.vector_store %arg7[%c0_11, %c0_12], %12 {strides = array<i32>} : memref<8x128xf32, #tpu.memory_space<vmem>>, vector<8x128xf32>,
    } else {
    }
    %c0 = arith.constant 0 : index
    %c0_1 = arith.constant 0 : index
    %3 = vector.load %arg7[%c0, %c0_1] : memref<8x128xf32, #tpu.memory_space<vmem>>, vector<8x128xf32>
    %c0_2 = arith.constant 0 : index
    %c0_3 = arith.constant 0 : index
    %4 = vector.load %arg2[%c0_2, %c0_3] : memref<8x128xbf16, #tpu.memory_space<vmem>>, vector<8x128xbf16>
    %c0_4 = arith.constant 0 : index
    %c0_5 = arith.constant 0 : index
    %5 = vector.load %arg3[%c0_4, %c0_5] : memref<128x128xbf16, #tpu.memory_space<vmem>>, vector<128x128xbf16>
    %cst = arith.constant dense<0.000000e+00> : vector<8x128xf32>
    %6 = tpu.matmul %4, %5, %cst {dimension_numbers = #tpu.dot_dimension_numbers<[1], [0], [0], [1], [0, 0, 1, 1], [], []>} : vector<8x128xbf16>, vector<128x128xbf16>, vector<8x128xf32> -> vector<8x128xf32>
    %7 = arith.addf %3, %6 : vector<8x128xf32>
    %c0_6 = arith.constant 0 : index
    %c0_7 = arith.constant 0 : index
    %8 = vector.load %arg7[%c0_6, %c0_7] : memref<8x128xf32, #tpu.memory_space<vmem>>, vector<8x128xf32>
    tpu.vector_store %arg7[%c0_6, %c0_7], %7 {strides = array<i32>} : memref<8x128xf32, #tpu.memory_space<vmem>>, vector<8x128xf32>,
    %c0_i32_8 = arith.constant 0 : i32
    %9 = arith.cmpi eq, %arg1, %c0_i32_8 : i32
    %10 = arith.extui %9 : i1 to i32
    %c0_i32_9 = arith.constant 0 : i32
    %11 = arith.cmpi ne, %10, %c0_i32_9 : i32
    scf.if %11 {
      %c0_10 = arith.constant 0 : index
      %c0_11 = arith.constant 0 : index
      %12 = vector.load %arg7[%c0_10, %c0_11] : memref<8x128xf32, #tpu.memory_space<vmem>>, vector<8x128xf32>
      %cst_12 = arith.constant 0.000000e+00 : f32
      %13 = vector.broadcast %cst_12 : f32 to vector<8x128xf32>
      %14 = arith.maximumf %12, %13 : vector<8x128xf32>
      %c0_13 = arith.constant 0 : index
      %c0_14 = arith.constant 0 : index
      %15 = vector.load %arg5[%c0_13, %c0_14] : memref<8x128xf32, #tpu.memory_space<vmem>>, vector<8x128xf32>
      tpu.vector_store %arg5[%c0_13, %c0_14], %14 {strides = array<i32>} : memref<8x128xf32, #tpu.memory_space<vmem>>, vector<8x128xf32>,
      %16 = tpu.iota {dimensions = array<i32: 1>} : vector<8x128xi32>
      %c32_i32 = arith.constant 32 : i32
      %17 = vector.broadcast %c32_i32 : i32 to vector<8x128xi32>
      %18 = arith.cmpi slt, %16, %17 : vector<8x128xi32>
      %cst_15 = arith.constant -1.000000e+30 : f32
      %19 = vector.broadcast %cst_15 : f32 to vector<8x128xf32>
      %20 = arith.select %18, %14, %19 : vector<8x128xi1>, vector<8x128xf32>
      %cst_16 = arith.constant dense<0xFF800000> : vector<8xf32>
      %21 = vector.multi_reduction <maximumf>, %20, %cst_16 [1] : vector<8x128xf32> to vector<8xf32>
      %22 = vector.shape_cast %21 : vector<8xf32> to vector<8x1xf32>
      %23 = vector.broadcast %22 : vector<8x1xf32> to vector<8x128xf32>
      %24 = arith.subf %20, %23 : vector<8x128xf32>
      %25 = math.exp %24 : vector<8x128xf32>
      %cst_17 = arith.constant dense<0.000000e+00> : vector<8xf32>
      %26 = vector.multi_reduction <add>, %25, %cst_17 [1] : vector<8x128xf32> to vector<8xf32>
      %27 = vector.shape_cast %26 : vector<8xf32> to vector<8x1xf32>
      %28 = math.log %27 : vector<8x1xf32>
      %29 = arith.addf %22, %28 : vector<8x1xf32>
      %c0_18 = arith.constant 0 : index
      %c0_19 = arith.constant 0 : index
      %30 = vector.load %arg4[%c0_18, %c0_19] : memref<8x1xi32, #tpu.memory_space<vmem>>, vector<8x1xi32>
      %31 = vector.broadcast %30 : vector<8x1xi32> to vector<8x128xi32>
      %32 = arith.cmpi eq, %16, %31 : vector<8x128xi32>
      %33 = arith.extui %32 : vector<8x128xi1> to vector<8x128xi32>
      %34 = arith.sitofp %33 : vector<8x128xi32> to vector<8x128xf32>
      %35 = arith.mulf %34, %14 : vector<8x128xf32>
      %cst_20 = arith.constant dense<0.000000e+00> : vector<8xf32>
      %36 = vector.multi_reduction <add>, %35, %cst_20 [1] : vector<8x128xf32> to vector<8xf32>
      %37 = vector.shape_cast %36 : vector<8xf32> to vector<8x1xf32>
      %38 = arith.subf %29, %37 : vector<8x1xf32>
      %c0_21 = arith.constant 0 : index
      %c0_22 = arith.constant 0 : index
      %39 = vector.load %arg6[%c0_21, %c0_22] : memref<8x1xf32, #tpu.memory_space<vmem>>, vector<8x1xf32>
      tpu.vector_store %arg6[%c0_21, %c0_22], %38 {strides = array<i32>} : memref<8x1xf32, #tpu.memory_space<vmem>>, vector<8x1xf32>,
    } else {
    }
    return
  }
  func.func @transform_0(%arg0: i32, %arg1: i32) -> (i32, i32) {
    %c0_i32 = arith.constant 0 : i32
    return %arg0, %arg1 : i32, i32
  }
  func.func @transform_1(%arg0: i32, %arg1: i32) -> (i32, i32) {
    %c0_i32 = arith.constant 0 : i32
    %c0_i32_0 = arith.constant 0 : i32
    return %arg1, %c0_i32 : i32, i32
  }
  func.func @transform_2(%arg0: i32, %arg1: i32) -> (i32, i32) {
    %c0_i32 = arith.constant 0 : i32
    %c0_i32_0 = arith.constant 0 : i32
    return %arg0, %c0_i32 : i32, i32
  }
  func.func @transform_3(%arg0: i32, %arg1: i32) -> (i32, i32) {
    %c0_i32 = arith.constant 0 : i32
    %c0_i32_0 = arith.constant 0 : i32
    return %arg0, %c0_i32 : i32, i32
  }
  func.func @transform_4(%arg0: i32, %arg1: i32) -> (i32, i32) {
    %c0_i32 = arith.constant 0 : i32
    %c0_i32_0 = arith.constant 0 : i32
    return %arg0, %c0_i32 : i32, i32
  }
}

</mosaic_0001>

<bundles_post_ra>
// kernel: tpu_custom_call.1
= control target key start
LH: loop header
LB: loop body
LE: loop exit
PB: predicated region body
PF: predicated region fallthrough
CT: control target
= control target key end

     0   :  { %10 = vsyncpa [#allocation4], 0  ;;  %s368_s0 = inlined_call_operand.vmem [shape: bf16[8,128], index: 0, kind: input, shape index: {}]   ;;  %s369_s1 = inlined_call_operand.hbm [shape: bf16[128,128], index: 1, kind: input, shape index: {}]   ;;  %s370_s2 = inlined_call_operand.vmem [shape: s32[8,1], index: 2, kind: input, shape index: {}]   ;;  %s371_s3 = inlined_call_operand.hbm [shape: f32[8,128], index: 3, kind: output, shape index: {0}]   ;;  %s372_s4 = inlined_call_operand.vmem [shape: f32[8,1], index: 4, kind: output, shape index: {1}]  }
   0x1   :  { %11 = vsyncpa [#allocation5], 0  ;;  %s303_s15 = smov [#allocation3]   ;;  %s255_s19 = scalar_lea.hbm %s369_s1, 1024 }
   0x2   :  { %s19_s16 = sshll.u32 %s303_s15, 4  ;;  %p256_p0 = scmp.ne.s32.totalorder %s369_s1, %s255_s19  ;;  %s20_s16 = int_to_ptr.vmem [resolvable:$true] %s19_s16 }
   0x3   :  { %p259_p1 = scmp.lt.u32.totalorder %s255_s19, %s369_s1 }
   0x5   :  { %p261_p2 = pnand %p259_p1, %p256_p0 }
   0x7   :  { %264 = shalt.err (!%p261_p2)
}
   0x8   :  { %s265_s24 = scalar_lea.vmem %s20_s16, 1024  ;;  %p270_p4 = scmp.lt.s32.totalorder %s20_s16, %s20_s16 }
   0x9   :  { %p266_p3 = scmp.ne.s32.totalorder %s20_s16, %s265_s24  ;;  %p271_p5 = scmp.lt.s32.totalorder %s265_s24, %s265_s24 }
   0xb   :  { %p272_p6 = por %p271_p5, %p270_p4 }
   0xd   :  { %p273_p7 = pnand %p272_p6, %p266_p3 }
   0xf   :  { %276 = shalt.err (!%p273_p7)
}
  0x10   :  { %s304_s25 = smov 64   ;;  %s305_s26 = smov 4  }
  0x11   :  { %25 = dma.hbm_to_vmem [thread:$0]  %s369_s1, 1024, %s20_s16, [#allocation4], %s304_s25, %s304_s25, %s305_s26  }
  0x12   :  { %299 = dma.done.wait [#allocation4], 1024  }
  0x13   :  { %300 = vsyncadd [#allocation4], 4294966272  ;;  %v306_v0 = vmov 0.0   ;;  %vm307_vm0 = vmmov 0   ;;  %v243_v1 = vld [vmem:[#allocation3] sm:$0xff]   ;;  %v244_v2 = vld [vmem:[#allocation3 + $0x8] sm:$0xff]   ;;  %v151_v11 = vlaneseq }
  0x14   :  { %215 = vmatprep.subr.bf16.mxu0 %v306_v0  ;;  %231 = vmatprep.mubr.msk.bf16.mxu0 %vm307_vm0, %v306_v0  ;;  %v245_v3 = vld [vmem:[#allocation3 + $0x10] sm:$0xff]   ;;  %v246_v4 = vld [vmem:[#allocation3 + $0x18] sm:$0xff]   ;;  %v247_v5 = vld [vmem:[#allocation3 + $0x20] sm:$0xff]   ;;  %v308_v10 = vmov 0  }
  0x15   :  { %216 = vmatpush3.bf16.msra.mxu0 %v243_v1  ;;  %v248_v6 = vld [vmem:[#allocation3 + $0x28] sm:$0xff]   ;;  %v249_v7 = vld [vmem:[#allocation3 + $0x30] sm:$0xff]   ;;  %v250_v8 = vld [vmem:[#allocation3 + $0x38] sm:$0xff]   ;;  %242 = vset.pattern.permute.xlu0 %v308_v10  ;;  %v152_v12 = vand.u32 127, %v151_v11 }
  0x16   :  { %217 = vmatprep.subr.bf16.mxu0 %v306_v0  ;;  %v38_v9 = vld [vmem:[%s368_s0] sm:$0xf]  ;;  %s309_s0 = smov [#allocation6]  }
  0x17   :  { %vm153_vm1 = vcmp.lt.s32.totalorder %v152_v12, 32  ;;  %v165_v19 = vld [vmem:[%s370_s2] sm:$0xff]  ;;  %s184_s6 = sshll.u32 %s309_s0, 4  ;;  %s185_s6 = int_to_ptr.vmem [resolvable:$true] %s184_s6 }
  0x18   :  { %s277_s7 = scalar_lea.vmem %s185_s6, 128  ;;  %p282_p9 = scmp.lt.s32.totalorder %s185_s6, %s185_s6 }
  0x19   :  { %218 = vmatpush3.bf16.msra.mxu0 %v244_v2  ;;  %p278_p8 = scmp.ne.s32.totalorder %s185_s6, %s277_s7  ;;  %p283_p10 = scmp.lt.s32.totalorder %s277_s7, %s277_s7 }
  0x1a   :  { %219 = vmatprep.subr.bf16.mxu0 %v306_v0 }
  0x1b   :  { %p284_p11 = por %p283_p10, %p282_p9 }
  0x1d   :  { %220 = vmatpush3.bf16.msra.mxu0 %v245_v3  ;;  %p285_p12 = pnand %p284_p11, %p278_p8 }
  0x1e   :  { %221 = vmatprep.subr.bf16.mxu0 %v306_v0 }
  0x21   :  { %222 = vmatpush3.bf16.msra.mxu0 %v246_v4 }
  0x22   :  { %223 = vmatprep.subr.bf16.mxu0 %v306_v0 }
  0x25   :  { %224 = vmatpush3.bf16.msra.mxu0 %v247_v5 }
  0x26   :  { %225 = vmatprep.subr.bf16.mxu0 %v306_v0 }
  0x29   :  { %226 = vmatpush3.bf16.msra.mxu0 %v248_v6 }
  0x2a   :  { %227 = vmatprep.subr.bf16.mxu0 %v306_v0 }
  0x2d   :  { %228 = vmatpush3.bf16.msra.mxu0 %v249_v7 }
  0x2e   :  { %229 = vmatprep.subr.bf16.mxu0 %v306_v0 }
  0x31   :  { %230 = vmatpush3.bf16.msra.mxu0 %v250_v8 }
  0x34   :  { %232 = vmatmul.mubr.bf16.vlgmr.msra.gmra.mrb[0].mxu0 %v38_v9 }
 0x107   :  { %v137_v13 = vpop.f32.mrb[0].mxu0 }
 0x108   :  { %v149_v14 = vmax.f32 %v137_v13, 0.0  ;;  %v233_v15 = vpop.f32.mrb[1].mxu0 }
 0x109   :  { %v140_v16 = vpop.f32.mrb[2].mxu0 }
 0x10a   :  { %150 = vst [vmem:[#allocation6] sm:$0xff] %v149_v14  ;;  %v234_v17 = vpop.f32.mrb[3].mxu0  ;;  %v154_v18 = vsel %vm153_vm1, %v149_v14, -1e+30 }
 0x10b   :  { %155 = vmax.xlane.f32.xlu0 %v154_v18 }
 0x121   :  { %167 = vperm.xlu0 %242, %v165_v19  }
 0x198   :  { %v156_v20 = vpop.xlane.xlu0 %155 }
 0x199   :  { %v157_v21 = vsub.f32 %v154_v18, %v156_v20 }
 0x19b   :  { %v158_v22 = vmul.f32 1.442695, %v157_v21 }
 0x19d   :  { %251 = vpow2.f32 %v158_v22 }
 0x1a0   :  { %v168_v23 = vpop.permute.xlu0 %167 }
 0x1a1   :  { %vm169_vm2 = vcmp.eq.s32.totalorder %v152_v12, %v168_v23 }
 0x1a2   :  { %v205_v25 = vsel %vm169_vm2, 1.0, %v306_v0 }
 0x1a3   :  { %v172_v26 = vmul.f32 %v205_v25, %v149_v14 }
 0x1a7   :  { %v252_v24 = vpop.eup %251 }
 0x1a8   :  { %160 = vadd.xlane.f32.xlu1 %v252_v24 }
 0x1ac   :  { %173 = vadd.xlane.f32.xlu1 %v172_v26 }
 0x1ad   :  { %288 = shalt.err (!%p285_p12)
}
 0x1ae   :  { %s289_s9 = scalar_lea.hbm %s371_s3, 128 }
 0x1af   :  { %p290_p13 = scmp.ne.s32.totalorder %s371_s3, %s289_s9  ;;  %p293_p0 = scmp.lt.u32.totalorder %s289_s9, %s371_s3 }
 0x1b1   :  { %p295_p1 = pnand %p293_p0, %p290_p13 }
 0x1b3   :  { %298 = shalt.err (!%p295_p1)
}
 0x1b4   :  { %187 = dma.vmem_to_hbm [thread:$0]  %s185_s6, 128, %s371_s3, [#allocation5]   ;;  %vm176_vm3 = vcmask 7168  }
 0x235   :  { %v161_v27 = vpop.xlane.xlu1 %160 }
 0x236   :  { %253 = vlog2.f32 %v161_v27 }
 0x239   :  { %v174_v31 = vpop.xlane.xlu1 %173 }
 0x240   :  { %v254_v28 = vpop.eup %253 }
 0x241   :  { %v163_v29 = vmul.f32 0.6931472, %v254_v28 }
 0x243   :  { %v164_v30 = vadd.f32 %v163_v29, %v156_v20 }
 0x245   :  { %v175_v32 = vsub.f32 %v164_v30, %v174_v31 }
 0x247   :  { %177 = vst.msk [vmem:[%s372_s4] sm:$0xff] %vm176_vm3, %v175_v32 }
 0x248   :  { %301 = dma.done.wait [#allocation5], 128  }
 0x249   :  { %302 = vsyncadd [#allocation5], 4294967168 }
 0x24a   :  { %195 = vsyncpa [#allocation4], 1 }
 0x24b   :  { %196 = vsyncpa [#allocation5], 1 }

</bundles_post_ra>
